<compile_context>
chip_gen: v7x
topology: tpu7x:2x2x1
jax: 0.10.0
libtpu: 0.0.40
codegen_flags: <defaults>
</compile_context>

<pallas_src>
import functools

import jax
import jax.numpy as jnp
from jax.experimental import pallas as pl
from jax.experimental.pallas import tpu as pltpu


def _accuracy_kernel(logits_ref, target_ref, out_ref, count_ref, *, n_total):
    i = pl.program_id(0)

    @pl.when(i == 0)
    def _():
        count_ref[...] = jnp.zeros_like(count_ref)

    x = logits_ref[...]                      # (TILE_N, C) native dtype
    tgt = target_ref[...]                    # (TILE_N, 1) int32 (-1 on padded rows)
    tn, c = x.shape

    # argmax along class axis, first-occurrence tie-break (matches torch/jnp).
    col_idx = jax.lax.broadcasted_iota(jnp.int32, (tn, c), 1)
    max_val = jnp.max(x, axis=1, keepdims=True)                   # (TILE_N, 1)
    is_max = x == max_val                                         # (TILE_N, C)
    pred = jnp.min(jnp.where(is_max, col_idx, c), axis=1,
                   keepdims=True)                                 # (TILE_N, 1) int32

    # Padded / stale rows have target == -1 and pred in [0, C] -> never match.
    correct = (pred == tgt).astype(jnp.float32)                   # (TILE_N, 1)
    count_ref[...] += jnp.sum(correct, axis=(0, 1), keepdims=True)

    @pl.when(i == pl.num_programs(0) - 1)
    def _():
        out_ref[...] = count_ref[...] / jnp.float32(n_total)


def _choose_tile_n(n: int, c: int, itemsize: int) -> int:
    """Tile rows so one logits buffer is ~4 MiB (Pallas double-buffers it)."""
    c_lanes = max(((c + 127) // 128) * 128, 128)   # lane-padded class dim
    budget = 4 * 1024 * 1024
    tile = budget // (c_lanes * itemsize)
    tile = max(8, min(int(tile), 1024))
    tile = (tile // 8) * 8
    n_pad8 = ((n + 7) // 8) * 8
    return min(tile, n_pad8)


def accuracy(output: jax.Array, target: jax.Array, *, tile_n: int | None = None) -> jax.Array:
    """output: (N, C) float (any dtype); target: (N,) int. Returns scalar f32 accuracy."""
    n, c = output.shape
    itemsize = jnp.dtype(output.dtype).itemsize

    if tile_n is None:
        tile_n = _choose_tile_n(n, c, itemsize)
    else:
        tile_n = max(8, (int(tile_n) // 8) * 8)
        tile_n = min(tile_n, ((n + 7) // 8) * 8)

    num_tiles = pl.cdiv(n, tile_n)
    n_padded = num_tiles * tile_n

    # Target as an int32 column, padded with -1 so out-of-range rows never count.
    tgt2d = target.astype(jnp.int32).reshape(n, 1)
    if n_padded != n:
        tgt2d = jnp.pad(tgt2d, ((0, n_padded - n), (0, 0)), constant_values=-1)

    kernel = functools.partial(_accuracy_kernel, n_total=n)

    out = pl.pallas_call(
        kernel,
        out_shape=jax.ShapeDtypeStruct((1, 1), jnp.float32),
        grid=(num_tiles,),
        in_specs=[
            pl.BlockSpec((tile_n, c), lambda i: (i, 0)),   # logits, native dtype
            pl.BlockSpec((tile_n, 1), lambda i: (i, 0)),   # padded int32 targets
        ],
        out_specs=pl.BlockSpec((1, 1), lambda i: (0, 0)),  # resident accumulator block
        scratch_shapes=[pltpu.VMEM((1, 1), jnp.float32)],
        compiler_params=pltpu.CompilerParams(
            dimension_semantics=("arbitrary",)),
    )(output, tgt2d)
    return out[0, 0]


if __name__ == "__main__":
    key = jax.random.PRNGKey(0)
    k1, k2, k3, k4 = jax.random.split(key, 4)

    # Small shape consistent with the module: N=8 samples, C=32 classes.
    N, C = 8, 32
    output = jax.random.normal(k1, (N, C), dtype=jnp.float32)
    target = jax.random.randint(k2, (N,), 0, C, dtype=jnp.int32)

    acc = accuracy(output, target)
    jax.block_until_ready(acc)
    ref = jnp.mean((jnp.argmax(output, axis=1) == target).astype(jnp.float32))
    assert jnp.allclose(acc, ref), (acc, ref)

    # Exercise the multi-tile / ragged-last-tile path with a forced small tile.
    N2, C2 = 37, 32
    output2 = jax.random.normal(k3, (N2, C2), dtype=jnp.float32)
    target2 = jax.random.randint(k4, (N2,), 0, C2, dtype=jnp.int32)

    acc2 = accuracy(output2, target2, tile_n=16)
    jax.block_until_ready(acc2)
    ref2 = jnp.mean((jnp.argmax(output2, axis=1) == target2).astype(jnp.float32))
    assert jnp.allclose(acc2, ref2), (acc2, ref2)

    print("KERNEL_OK")
</pallas_src>

<mosaic_0001>
module attributes {stable_mosaic.version = 11 : i64} {
  func.func @_accuracy_kernel(%arg0: i32, %arg1: memref<8x32xf32, #tpu.memory_space<vmem>>, %arg2: memref<8x1xi32, #tpu.memory_space<vmem>>, %arg3: memref<1x1xf32, #tpu.memory_space<vmem>>, %arg4: memref<1x1xf32, #tpu.memory_space<vmem>>) attributes {dimension_semantics = [#tpu.dimension_semantics<arbitrary>], iteration_bounds = array<i64: 1>, scalar_prefetch = 0 : i64, scratch_operands = 1 : i64, tpu.core_type = #tpu.core_type<tc>, window_params = [{transform_indices = @transform_0, window_bounds = array<i64: 8, 32>}, {transform_indices = @transform_1, window_bounds = array<i64: 8, 1>}, {pipeline_mode = #tpu.pipeline_mode<synchronous>, transform_indices = @transform_2, window_bounds = array<i64: 1, 1>}]} {
    %c0_i32 = arith.constant 0 : i32
    %0 = arith.cmpi eq, %arg0, %c0_i32 : i32
    %1 = arith.extui %0 : i1 to i32
    %c0_i32_0 = arith.constant 0 : i32
    %2 = arith.cmpi ne, %1, %c0_i32_0 : i32
    scf.if %2 {
      %cst_12 = arith.constant 0.000000e+00 : f32
      %28 = vector.broadcast %cst_12 : f32 to vector<1x1xf32>
      %c0_13 = arith.constant 0 : index
      %c0_14 = arith.constant 0 : index
      %29 = vector.load %arg4[%c0_13, %c0_14] : memref<1x1xf32, #tpu.memory_space<vmem>>, vector<1x1xf32>
      tpu.vector_store %arg4[%c0_13, %c0_14], %28 {strides = array<i32>} : memref<1x1xf32, #tpu.memory_space<vmem>>, vector<1x1xf32>,
    } else {
    }
    %c0 = arith.constant 0 : index
    %c0_1 = arith.constant 0 : index
    %3 = vector.load %arg1[%c0, %c0_1] : memref<8x32xf32, #tpu.memory_space<vmem>>, vector<8x32xf32>
    %c0_2 = arith.constant 0 : index
    %c0_3 = arith.constant 0 : index
    %4 = vector.load %arg2[%c0_2, %c0_3] : memref<8x1xi32, #tpu.memory_space<vmem>>, vector<8x1xi32>
    %5 = tpu.iota {dimensions = array<i32: 1>} : vector<8x32xi32>
    %cst = arith.constant dense<0xFF800000> : vector<8xf32>
    %6 = vector.multi_reduction <maximumf>, %3, %cst [1] : vector<8x32xf32> to vector<8xf32>
    %7 = vector.shape_cast %6 : vector<8xf32> to vector<8x1xf32>
    %8 = vector.broadcast %7 : vector<8x1xf32> to vector<8x32xf32>
    %9 = arith.cmpf oeq, %3, %8 : vector<8x32xf32>
    %c32_i32 = arith.constant 32 : i32
    %10 = vector.broadcast %c32_i32 : i32 to vector<8x32xi32>
    %11 = arith.select %9, %5, %10 : vector<8x32xi1>, vector<8x32xi32>
    %cst_4 = arith.constant dense<2147483647> : vector<8xi32>
    %12 = vector.multi_reduction <minsi>, %11, %cst_4 [1] : vector<8x32xi32> to vector<8xi32>
    %13 = vector.shape_cast %12 : vector<8xi32> to vector<8x1xi32>
    %14 = arith.cmpi eq, %13, %4 : vector<8x1xi32>
    %15 = arith.extui %14 : vector<8x1xi1> to vector<8x1xi32>
    %16 = arith.sitofp %15 : vector<8x1xi32> to vector<8x1xf32>
    %c0_5 = arith.constant 0 : index
    %c0_6 = arith.constant 0 : index
    %17 = vector.load %arg4[%c0_5, %c0_6] : memref<1x1xf32, #tpu.memory_space<vmem>>, vector<1x1xf32>
    %18 = vector.shape_cast %16 : vector<8x1xf32> to vector<1x8x1xf32>
    %cst_7 = arith.constant dense<0.000000e+00> : vector<1xf32>
    %19 = vector.multi_reduction <add>, %18, %cst_7 [1, 2] : vector<1x8x1xf32> to vector<1xf32>
    %20 = vector.shape_cast %19 : vector<1xf32> to vector<1x1x1xf32>
    %21 = vector.extract %20[0, 0, 0] : f32 from vector<1x1x1xf32>
    %22 = vector.broadcast %21 : f32 to vector<1x1xf32>
    %23 = arith.addf %17, %22 : vector<1x1xf32>
    %c0_8 = arith.constant 0 : index
    %c0_9 = arith.constant 0 : index
    %24 = vector.load %arg4[%c0_8, %c0_9] : memref<1x1xf32, #tpu.memory_space<vmem>>, vector<1x1xf32>
    tpu.vector_store %arg4[%c0_8, %c0_9], %23 {strides = array<i32>} : memref<1x1xf32, #tpu.memory_space<vmem>>, vector<1x1xf32>,
    %c0_i32_10 = arith.constant 0 : i32
    %25 = arith.cmpi eq, %arg0, %c0_i32_10 : i32
    %26 = arith.extui %25 : i1 to i32
    %c0_i32_11 = arith.constant 0 : i32
    %27 = arith.cmpi ne, %26, %c0_i32_11 : i32
    scf.if %27 {
      %c0_12 = arith.constant 0 : index
      %c0_13 = arith.constant 0 : index
      %28 = vector.load %arg4[%c0_12, %c0_13] : memref<1x1xf32, #tpu.memory_space<vmem>>, vector<1x1xf32>
      %cst_14 = arith.constant 8.000000e+00 : f32
      %29 = vector.broadcast %cst_14 : f32 to vector<1x1xf32>
      %30 = arith.divf %28, %29 : vector<1x1xf32>
      %c0_15 = arith.constant 0 : index
      %c0_16 = arith.constant 0 : index
      %31 = vector.load %arg3[%c0_15, %c0_16] : memref<1x1xf32, #tpu.memory_space<vmem>>, vector<1x1xf32>
      tpu.vector_store %arg3[%c0_15, %c0_16], %30 {strides = array<i32>} : memref<1x1xf32, #tpu.memory_space<vmem>>, vector<1x1xf32>,
    } else {
    }
    return
  }
  func.func @transform_0(%arg0: i32) -> (i32, i32) {
    %c0_i32 = arith.constant 0 : i32
    %c0_i32_0 = arith.constant 0 : i32
    return %arg0, %c0_i32 : i32, i32
  }
  func.func @transform_1(%arg0: i32) -> (i32, i32) {
    %c0_i32 = arith.constant 0 : i32
    %c0_i32_0 = arith.constant 0 : i32
    return %arg0, %c0_i32 : i32, i32
  }
  func.func @transform_2(%arg0: i32) -> (i32, i32) {
    %c0_i32 = arith.constant 0 : i32
    %c0_i32_0 = arith.constant 0 : i32
    %c0_i32_1 = arith.constant 0 : i32
    return %c0_i32, %c0_i32_0 : i32, i32
  }
}

</mosaic_0001>

<bundles_post_ra>
// kernel: tpu_custom_call.1
= control target key start
LH: loop header
LB: loop body
LE: loop exit
PB: predicated region body
PF: predicated region fallthrough
CT: control target
= control target key end

     0   :  { %vm22_vm0 = vcmask 261120   ;;  %s150_s0 = inlined_call_operand.vmem [shape: f32[8,32], index: 0, kind: input, shape index: {}]   ;;  %s151_s1 = inlined_call_operand.vmem [shape: s32[8,1], index: 1, kind: input, shape index: {}]   ;;  %s152_s2 = inlined_call_operand.hbm [shape: f32[1,1], index: 2, kind: output, shape index: {}]  }
   0x1   :  { %v18_v0 = vld [vmem:[%s150_s0] sm:$0xff] }
   0x2   :  { %7 = vsyncpa [#allocation4], 0  ;;  %v23_v1 = vsel %vm22_vm0, %v18_v0, -inf  ;;  %v20_v2 = vlaneseq  ;;  %vm16_vm3 = vcmask 0   ;;  %v112_v13 = vmov 0.0   ;;  %v19_v18 = vld [vmem:[%s151_s1] sm:$0xff] }
   0x3   :  { %24 = vmax.xlane.f32.xlu0 %v23_v1  ;;  %17 = vst.msk [vmem:[#allocation2] sm:$0x1] %vm16_vm3, %v112_v13  ;;  %vm47_vm4 = vcmask 7168   ;;  %s113_s1 = smov [#allocation3]  }
   0x4   :  { %v21_v3 = vand.u32 127, %v20_v2  ;;  %s75_s13 = sshll.u32 %s113_s1, 4  ;;  %s76_s13 = int_to_ptr.vmem [resolvable:$true] %s75_s13 }
   0x5   :  { %s88_s14 = scalar_lea.vmem %s76_s13, 16  ;;  %s92_s15 = scalar_lea.vmem %s76_s13, 32 }
   0x6   :  { %p89_p0 = scmp.ne.s32.totalorder %s76_s13, %s88_s14  ;;  %p93_p1 = scmp.lt.s32.totalorder %s76_s13, %s76_s13 }
   0x7   :  { %p94_p2 = scmp.lt.s32.totalorder %s92_s15, %s88_s14 }
   0x9   :  { %p95_p3 = por %p94_p2, %p93_p1 }
   0xa   :  { %v46_v29 = vld [vmem:[#allocation2] sm:$0x1] }
   0xb   :  { %p96_p4 = pnand %p95_p3, %p89_p0 }
  0x90   :  { %v25_v4 = vpop.xlane.xlu0 %24 }
  0x91   :  { %vm26_vm1 = vcmp.eq.f32.partialorder %v18_v0, %v25_v4 }
  0x92   :  { %v27_v5 = vsel %vm26_vm1, %v21_v3, 32 }
  0x93   :  { %v28_v6 = vsel %vm22_vm0, %v27_v5, 2147483647 }
  0x94   :  { %v30_v7 = vshra.s32 %v28_v6, 16  ;;  %v29_v9 = vand.u32 65535, %v28_v6 }
  0x96   :  { %v32_v8 = vcvt.s32.f32 %v30_v7  ;;  %v31_v11 = vcvt.s32.f32 %v29_v9 }
  0x98   :  { %33 = vmin.xlane.f32.xlu0 %v32_v8 }
 0x125   :  { %v34_v10 = vpop.xlane.xlu0 %33 }
 0x126   :  { %vm35_vm2 = vcmp.eq.f32.partialorder %v32_v8, %v34_v10  ;;  %v40_v14 = vcvt.f32.s32 %v34_v10 }
 0x127   :  { %v36_v12 = vsel %vm35_vm2, %v31_v11, inf }
 0x128   :  { %37 = vmin.xlane.f32.xlu1 %v36_v12  ;;  %v41_v16 = vshll.u32 %v40_v14, 16 }
 0x1b5   :  { %v38_v15 = vpop.xlane.xlu1 %37 }
 0x1b6   :  { %v39_v17 = vcvt.f32.s32 %v38_v15 }
 0x1b8   :  { %v42_v19 = vadd.s32 %v41_v16, %v39_v17 }
 0x1ba   :  { %vm43_vm5 = vcmp.eq.s32.totalorder %v42_v19, %v19_v18 }
 0x1bb   :  { %v83_v20 = vsel %vm43_vm5, 1.0, %v112_v13 }
 0x1bc   :  { %v48_v21 = vsel %vm47_vm4, %v83_v20, 0.0 }
 0x1bd   :  { %49 = vadd.xlane.f32.xlu1 %v48_v21 }
 0x24a   :  { %v50_v22 = vpop.xlane.xlu1 %49 }
 0x24b   :  { %v51_v23 = vrot.slane %v50_v22, 4 }
 0x24d   :  { %v52_v24 = vadd.f32 %v51_v23, %v50_v22 }
 0x24f   :  { %v53_v25 = vrot.slane %v52_v24, 2 }
 0x251   :  { %v54_v26 = vadd.f32 %v53_v25, %v52_v24 }
 0x253   :  { %v55_v27 = vrot.slane %v54_v26, 1 }
 0x255   :  { %v56_v28 = vadd.f32 %v55_v27, %v54_v26 }
 0x257   :  { %84 = vpush %v56_v28 }
 0x288   :  { %s85_s12 = spop %84 }
 0x289   :  { %v58_v30 = vstv %s85_s12 }
 0x28a   :  { %v59_v31 = vadd.f32 %v58_v30, %v46_v29 }
 0x28c   :  { %61 = vst.msk [vmem:[#allocation2] sm:$0x1] %vm16_vm3, %v59_v31 }
 0x293   :  { %v65_v32 = vld [vmem:[#allocation2] sm:$0x1] }
 0x294   :  { %v67_v33 = vmul.f32 0.125, %v65_v32 }
 0x296   :  { %68 = vst.msk [vmem:[#allocation3] sm:$0x1] %vm16_vm3, %v67_v33 }
 0x297   :  { %99 = shalt.err (!%p96_p4)
}
 0x298   :  { %s100_s18 = scalar_lea.hbm %s152_s2, 16 }
 0x299   :  { %p101_p5 = scmp.ne.s32.totalorder %s152_s2, %s100_s18  ;;  %p104_p6 = scmp.lt.u32.totalorder %s100_s18, %s152_s2 }
 0x29b   :  { %p106_p7 = pnand %p104_p6, %p101_p5 }
 0x29d   :  { %109 = shalt.err (!%p106_p7)
}
 0x29e   :  { %78 = dma.vmem_to_hbm [thread:$0]  %s76_s13, 16, %s152_s2, [#allocation4]  }
 0x29f   :  { %110 = dma.done.wait [#allocation4], 16  }
 0x2a0   :  { %111 = vsyncadd [#allocation4], 4294967280 }
 0x2a1   :  { %82 = vsyncpa [#allocation4], 1 }

</bundles_post_ra>
